<compile_context>
chip_gen: v6e
topology: v6e:2x2x1
jax: 0.10.0
libtpu: 0.0.40
codegen_flags: <defaults>
</compile_context>

<pallas_src>
import functools
import math

import jax
import jax.numpy as jnp
import numpy as np
from jax import lax
from jax.experimental import pallas as pl
from jax.experimental.pallas import tpu as pltpu

EPS32 = 0.004          # self.eps[torch.float32]
MIN_NORM = 1e-15       # self.min_norm
MAX_NORM = 1.0e6       # self.max_norm
LANE = 128
CHUNK = 128            # in-kernel sub-column width (keeps intermediates in vregs)

SQRT_EPS32 = float(np.sqrt(np.float32(EPS32)))               # sqrt(max(.,eps)) split
COSH_SQRT_EPS32 = float(np.cosh(np.float64(SQRT_EPS32)))     # expmap(0, x) scale


# ---------- hyperboloid math, row layout (wrapper precompute + reference) ----------

def _mask_tail(a):
    """1.0 for columns >= 1, 0.0 for column 0 (the 'time' coordinate)."""
    col = jax.lax.broadcasted_iota(jnp.int32, a.shape, a.ndim - 1)
    return (col != 0).astype(a.dtype)


def _cosh(t):
    return 0.5 * (jnp.exp(t) + jnp.exp(-t))


def _sinh(t):
    return 0.5 * (jnp.exp(t) - jnp.exp(-t))


def _arcosh(t):
    return jnp.log(t + jnp.sqrt(t * t - 1.0))


def _proj(x):
    m = _mask_tail(x)
    xm = x * m
    y_sqnorm = jnp.sum(xm * xm, axis=-1, keepdims=True)
    head = jnp.sqrt(jnp.maximum(y_sqnorm, EPS32))
    return (1.0 - m) * head + m * x


def _proj_tan(u, x):
    m = _mask_tail(u)
    ux = jnp.sum((x * m) * u, axis=-1, keepdims=True)
    head = ux / jnp.maximum(x[:, 0:1], EPS32)
    return (1.0 - m) * head + m * u


def _proj_tan0(u):
    return u * _mask_tail(u)


def _expmap0(u):
    m = _mask_tail(u)
    um = u * m
    x_norm = jnp.sqrt(jnp.sum(um * um, axis=-1, keepdims=True))
    x_norm = jnp.maximum(x_norm, MIN_NORM)
    theta = x_norm
    head = _cosh(theta)
    tail = _sinh(theta) * um / x_norm
    res = (1.0 - m) * head + m * tail
    return _proj(res)


def _logmap0(x):
    m = _mask_tail(x)
    xm = x * m
    y_norm = jnp.sqrt(jnp.sum(xm * xm, axis=-1, keepdims=True))
    y_norm = jnp.maximum(y_norm, MIN_NORM)
    theta = jnp.maximum(x[:, 0:1], 1.0 + EPS32)
    return m * (_arcosh(theta) * xm / y_norm)


def _minkowski_dot(x, y):
    return jnp.sum(x * y, axis=-1, keepdims=True) - 2.0 * x[:, 0:1] * y[:, 0:1]


def _minkowski_norm(u):
    return jnp.sqrt(jnp.maximum(_minkowski_dot(u, u), EPS32))


def _expmap(u, x):
    normu = _minkowski_norm(u)
    theta = jnp.minimum(normu, MAX_NORM)
    theta = jnp.maximum(theta, MIN_NORM)
    result = _cosh(theta) * x + _sinh(theta) * u / theta
    return _proj(result)


def _ptransp0(x, u):
    m = _mask_tail(x)
    x0 = x[:, 0:1]
    xm = x * m
    y_norm = jnp.maximum(
        jnp.sqrt(jnp.sum(xm * xm, axis=-1, keepdims=True)), MIN_NORM)
    y_normalized = xm / y_norm
    v = (1.0 - m) * (-y_norm) + m * (x0 * y_normalized)
    alpha = jnp.sum(y_normalized * (u * m), axis=-1, keepdims=True)
    res = u - alpha * v
    return _proj_tan(res, x)


def _mobius_add(x, y):
    u = _logmap0(y)
    v = _ptransp0(x, u)
    return _expmap(v, x)


def _forward_math(x, wt, b2):
    """Faithful transliteration of HypLinear.forward (eval), wt = weight.T."""
    u = _logmap0(x)
    mu = jnp.dot(u, wt, preferred_element_type=jnp.float32)
    mv = _expmap0(mu)
    res = _proj(mv)
    bias_t = _proj_tan0(b2)
    hyp_bias = _proj(_expmap0(bias_t))
    res = _mobius_add(res, hyp_bias)
    res = _proj(res)
    return res


# ---------- Pallas kernel (feature-major layout, chunked elementwise chain) ----------

def hnn_kernel(xt_ref, w_ref, ub_ref, o_ref, *, mode, chunk):
    din, tile = xt_ref.shape
    dout = o_ref.shape[0]
    n_chunks = tile // chunk

    w = w_ref[...]                                           # resident (Dout, Din)

    # Row-0 ("time") masks for one chunk, built once per grid step.  tail_in
    # is an aligned sublane slice of tail_out when Din <= Dout (review).
    tail_out = lax.broadcasted_iota(jnp.int32, (dout, chunk), 0) != 0
    if din <= dout:
        tail_in = tail_out[:din]
    else:
        tail_in = lax.broadcasted_iota(jnp.int32, (din, chunk), 0) != 0

    if mode == "full":
        # One explicit broadcast per grid step (JAX does not CSE broadcasts);
        # reused by both alpha and pre in every chunk.
        ubb = jnp.broadcast_to(ub_ref[...], (dout, chunk))

    # Short fixed trip count -> fully unrolled (identical code to the
    # recommended lax.fori_loop(..., unroll=True)) with *static* 128-aligned
    # sub-column slices.  Each intermediate is a ~6-vreg register-resident
    # array instead of a spilled (Dout, tile) VMEM slab (review).
    for c in range(n_chunks):
        lo = c * chunk
        x = xt_ref[:, lo:lo + chunk]                         # (Din, chunk)

        # ---- logmap0(x) ----
        xm = jnp.where(tail_in, x, 0.0)
        y_sq = jnp.sum(xm * xm, axis=0, keepdims=True)       # (1, chunk)
        y_norm = jnp.maximum(jnp.sqrt(y_sq), MIN_NORM)
        th0 = jnp.maximum(x[0:1, :], 1.0 + EPS32)
        arc = jnp.log(th0 + jnp.sqrt(th0 * th0 - 1.0))       # arcosh
        u = (arc / y_norm) * xm                              # row 0 stays 0

        # ---- tangent-space matmul: mu = W @ u ----
        mu = jnp.dot(w, u, preferred_element_type=jnp.float32)   # (Dout, chunk)

        # ---- proj(expmap0(mu)); the cosh head is always overwritten by
        #      proj, so it is never computed; forward()'s extra proj is
        #      idempotent and dropped. ----
        mum = jnp.where(tail_out, mu, 0.0)
        n_sq = jnp.sum(mum * mum, axis=0, keepdims=True)
        nrm = jnp.maximum(jnp.sqrt(n_sq), MIN_NORM)          # theta
        e = jnp.exp(nrm)
        e_inv = jnp.exp(-nrm)                                # dedup: 2 exps total
        sinh_n = 0.5 * (e - e_inv)
        tail = (sinh_n / nrm) * mum                          # row 0 == 0
        t_sq = jnp.sum(tail * tail, axis=0, keepdims=True)
        s_t = jnp.sqrt(t_sq)                                 # deduped sqrt (review)
        head = jnp.maximum(s_t, SQRT_EPS32)                  # == sqrt(max(t_sq, EPS32))
        # res = proj(expmap0(mu)) = [head ; tail_{>=1}]

        if mode == "none":
            # use_bias=False: forward() returns proj(mv) directly.
            out = jnp.where(tail_out, tail, head)

        elif mode == "zero":
            # bias == 0  =>  u_bias == 0 and vt == 0, but expmap(0, res) is
            # NOT an identity: minkowski_norm clamps the zero tangent to eps,
            # so res is scaled by cosh(sqrt(eps)) before the final proj.
            # Reproduced exactly, skipping the rest of the mobius_add block.
            sc = COSH_SQRT_EPS32
            out_tail = sc * tail
            out_head = jnp.sqrt(jnp.maximum((sc * sc) * t_sq, EPS32))
            out = jnp.where(tail_out, out_tail, out_head)

        else:  # mode == "full": mobius_add(res, hyp_bias) with hoisted u_bias
            # ptransp0(res, u_bias) -- y_hat eliminated (review): only two
            # lane-dense (1, chunk) divisions instead of a (Dout, chunk) one,
            # and t_sq / s_t are reused instead of recomputing the norm.
            y_norm2 = jnp.maximum(s_t, MIN_NORM)
            inv_yn = 1.0 / y_norm2                           # (1, chunk)
            alpha = jnp.sum(tail * ubb, axis=0, keepdims=True) * inv_yn
            coef = alpha * (head * inv_yn)                   # alpha * x0 / ||y||
            pre = ubb - coef * tail                          # rows >= 1 of (u - alpha*v)
            # proj_tan(pre, res): row 0 of pre is discarded, so never built.
            ux = jnp.sum(tail * pre, axis=0, keepdims=True)
            head_v = ux / jnp.maximum(head, EPS32)
            vt = jnp.where(tail_out, pre, head_v)
            # expmap(vt, res); its trailing proj is the final projection (the
            # explicit last proj in forward() is idempotent and dropped).
            mdot = jnp.sum(vt * vt, axis=0, keepdims=True) - 2.0 * head_v * head_v
            normu = jnp.sqrt(jnp.maximum(mdot, EPS32))
            th = jnp.maximum(jnp.minimum(normu, MAX_NORM), MIN_NORM)
            e2 = jnp.exp(th)
            e2_inv = jnp.exp(-th)
            cosh2 = 0.5 * (e2 + e2_inv)
            sinh2 = 0.5 * (e2 - e2_inv)
            res = jnp.where(tail_out, tail, head)
            result = cosh2 * res + (sinh2 / th) * vt
            rtail = jnp.where(tail_out, result, 0.0)
            r_sq = jnp.sum(rtail * rtail, axis=0, keepdims=True)
            rhead = jnp.sqrt(jnp.maximum(r_sq, EPS32))
            out = jnp.where(tail_out, result, rhead)

        o_ref[:, lo:lo + chunk] = out.astype(o_ref.dtype)


# ---------- wrapper ----------

def _choose_tiling(n, block_rows):
    """Wrapper-owned tile selection (review): big tiles by default, but keep
    >= 2 grid steps when possible so v7x's two TensorCores both get work."""
    nb = pl.cdiv(max(n, 1), CHUNK)                # total 128-point chunks
    cpt = max(1, min(block_rows // CHUNK, nb))    # chunks per grid step
    if nb >= 2 and cpt >= nb:
        cpt = max(1, nb // 2)
    grid = pl.cdiv(nb, cpt)
    tile = cpt * CHUNK
    return tile, grid, grid * tile


def hnn_layer_forward(x, weight, bias, *, use_bias=True, block_rows=1024,
                      x_is_feature_major=False, return_feature_major=False):
    """HypLinear / HNNLayer forward (eval).

    Default interface matches the module: x (N, Din) -> (N, Dout).
    Set x_is_feature_major / return_feature_major to pass/receive (D, N)
    activations and skip both wrapper-side transpose passes over HBM
    (recommended for stacked layers; biggest win on v5e).
    """
    weight = weight.astype(jnp.float32)
    bias = bias.astype(jnp.float32)
    x = x.astype(jnp.float32)
    dout, din = weight.shape
    n = x.shape[1] if x_is_feature_major else x.shape[0]

    # Static bias-mode selection (trace-safe): "none" (use_bias=False),
    # "zero" (exact fast path for the module's default zero-bias init),
    # "full" (general hoisted mobius_add path).
    if not use_bias:
        mode = "none"
    else:
        bias_is_zero = False
        try:
            bias_is_zero = bool(jnp.all(bias == 0.0))
        except (jax.errors.ConcretizationTypeError,
                jax.errors.TracerBoolConversionError):
            bias_is_zero = False                  # traced bias -> general path
        mode = "zero" if bias_is_zero else "full"

    if mode == "full":
        # Parameter-only bias path hoisted out of the kernel:
        # u_bias = logmap0(proj(expmap0(proj_tan0(b)))), component 0 == 0.
        b2 = bias.reshape(1, dout)
        ub_col = _logmap0(_proj(_expmap0(_proj_tan0(b2)))).T   # (Dout, 1)
    else:
        ub_col = jnp.zeros((dout, 1), jnp.float32)

    tile, grid, n_pad = _choose_tiling(n, block_rows)

    # Feature-major, zero-padded layout: features on sublanes, batch on lanes.
    # (Zero columns are numerically safe: every divisor is clamped in-kernel.)
    if x_is_feature_major:
        xt = x if n == n_pad else jnp.pad(x, ((0, 0), (0, n_pad - n)))
    else:
        xt = jnp.zeros((din, n_pad), jnp.float32).at[:, :n].set(x.T)

    kernel = functools.partial(hnn_kernel, mode=mode, chunk=CHUNK)
    out_t = pl.pallas_call(
        kernel,
        out_shape=jax.ShapeDtypeStruct((dout, n_pad), jnp.float32),
        grid=(grid,),
        in_specs=[
            pl.BlockSpec((din, tile), lambda i: (0, i)),      # streamed batch tile
            pl.BlockSpec((dout, din), lambda i: (0, 0)),      # resident weight
            pl.BlockSpec((dout, 1), lambda i: (0, 0)),        # resident bias tangent
        ],
        out_specs=pl.BlockSpec((dout, tile), lambda i: (0, i)),
        compiler_params=pltpu.CompilerParams(
            dimension_semantics=("parallel",),
        ),
        cost_estimate=pl.CostEstimate(
            flops=2 * n_pad * din * dout + 90 * n_pad * dout,
            transcendentals=11 * n_pad,
            bytes_accessed=4 * (din * n_pad + dout * n_pad + dout * din + dout),
        ),
    )(xt, weight, ub_col)

    if return_feature_major:
        return out_t[:, :n]
    return out_t[:, :n].T


# ---------- main ----------

if __name__ == "__main__":
    in_features, out_features, batch = 32, 48, 200

    key = jax.random.PRNGKey(0)
    k_w, k_x, k_b = jax.random.split(key, 3)

    # xavier_uniform_(weight, gain=sqrt(2)); constant_(bias, 0)
    bound = math.sqrt(2.0) * math.sqrt(6.0 / (in_features + out_features))
    weight = jax.random.uniform(
        k_w, (out_features, in_features), jnp.float32, -bound, bound)
    bias0 = jnp.zeros((out_features,), jnp.float32)

    # Valid hyperboloid input points: x = [sqrt(1 + ||y||^2), y]
    y = 0.5 * jax.random.normal(k_x, (batch, in_features - 1), jnp.float32)
    x0 = jnp.sqrt(1.0 + jnp.sum(y * y, axis=-1, keepdims=True))
    x = jnp.concatenate([x0, y], axis=-1)                     # (batch, in_features)

    # Case 1: module's default init (bias == 0) -> exact zero-bias fast path.
    out0 = jax.block_until_ready(hnn_layer_forward(x, weight, bias0))
    ref0 = jax.block_until_ready(_forward_math(x, weight.T, bias0.reshape(1, -1)))

    # Case 2: non-zero bias -> full hoisted mobius_add / ptransp0 path.
    bias1 = 0.1 * jax.random.normal(k_b, (out_features,), jnp.float32)
    out1 = jax.block_until_ready(hnn_layer_forward(x, weight, bias1))
    ref1 = jax.block_until_ready(_forward_math(x, weight.T, bias1.reshape(1, -1)))

    # Case 3: feature-major I/O (the layout a stacked HNN would keep between
    # layers, skipping both wrapper transpose passes).
    out2 = jax.block_until_ready(
        hnn_layer_forward(x.T, weight, bias1,
                          x_is_feature_major=True, return_feature_major=True))

    assert out0.shape == (batch, out_features) and out0.dtype == jnp.float32
    assert out1.shape == (batch, out_features)
    assert out2.shape == (out_features, batch)
    assert bool(jnp.all(jnp.isfinite(out0))) and bool(jnp.all(jnp.isfinite(out1)))
    # 5e-3 slack covers the in-kernel MXU f32 pass decomposition vs XLA's
    # reference dot plus last-ulp effects of the algebraic divide rewrites
    # (alpha / v via 1/||y|| instead of the reference's elementwise division).
    np.testing.assert_allclose(np.asarray(out0), np.asarray(ref0), rtol=5e-3, atol=5e-3)
    np.testing.assert_allclose(np.asarray(out1), np.asarray(ref1), rtol=5e-3, atol=5e-3)
    np.testing.assert_allclose(np.asarray(out2), np.asarray(ref1).T, rtol=5e-3, atol=5e-3)
    print("KERNEL_OK")
</pallas_src>

<mosaic_0001>
module attributes {stable_mosaic.version = 11 : i64} {
  func.func @hnn_kernel(%arg0: i32, %arg1: memref<32x128xf32, #tpu.memory_space<vmem>>, %arg2: memref<48x32xf32, #tpu.memory_space<vmem>>, %arg3: memref<48x1xf32, #tpu.memory_space<vmem>>, %arg4: memref<48x128xf32, #tpu.memory_space<vmem>>) attributes {dimension_semantics = [#tpu.dimension_semantics<parallel>], iteration_bounds = array<i64: 2>, scalar_prefetch = 0 : i64, scratch_operands = 0 : i64, tpu.core_type = #tpu.core_type<tc>, window_params = [{transform_indices = @transform_0, window_bounds = array<i64: 32, 128>}, {pipeline_mode = #tpu.pipeline_mode<synchronous>, transform_indices = @transform_1, window_bounds = array<i64: 48, 32>}, {pipeline_mode = #tpu.pipeline_mode<synchronous>, transform_indices = @transform_2, window_bounds = array<i64: 48, 1>}, {transform_indices = @transform_3, window_bounds = array<i64: 48, 128>}]} {
    %c0 = arith.constant 0 : index
    %c0_0 = arith.constant 0 : index
    %0 = vector.load %arg2[%c0, %c0_0] : memref<48x32xf32, #tpu.memory_space<vmem>>, vector<48x32xf32>
    %1 = tpu.iota {dimensions = array<i32: 0>} : vector<48x128xi32>
    %c0_i32 = arith.constant 0 : i32
    %2 = vector.broadcast %c0_i32 : i32 to vector<48x128xi32>
    %3 = arith.cmpi ne, %1, %2 : vector<48x128xi32>
    %4 = vector.extract_strided_slice %3 {offsets = [0, 0], sizes = [32, 128], strides = [1, 1]} : vector<48x128xi1> to vector<32x128xi1>
    %c0_1 = arith.constant 0 : index
    %c0_2 = arith.constant 0 : index
    %5 = vector.load %arg1[%c0_1, %c0_2] : memref<32x128xf32, #tpu.memory_space<vmem>>, vector<32x128xf32>
    %cst = arith.constant 0.000000e+00 : f32
    %6 = vector.broadcast %cst : f32 to vector<32x128xf32>
    %7 = arith.select %4, %5, %6 : vector<32x128xi1>, vector<32x128xf32>
    %8 = arith.mulf %7, %7 : vector<32x128xf32>
    %cst_3 = arith.constant dense<0.000000e+00> : vector<128xf32>
    %9 = vector.multi_reduction <add>, %8, %cst_3 [0] : vector<32x128xf32> to vector<128xf32>
    %10 = vector.shape_cast %9 : vector<128xf32> to vector<1x128xf32>
    %11 = math.sqrt %10 : vector<1x128xf32>
    %cst_4 = arith.constant 1.000000e-15 : f32
    %12 = vector.broadcast %cst_4 : f32 to vector<1x128xf32>
    %13 = arith.maximumf %11, %12 : vector<1x128xf32>
    %14 = vector.extract_strided_slice %5 {offsets = [0, 0], sizes = [1, 128], strides = [1, 1]} : vector<32x128xf32> to vector<1x128xf32>
    %cst_5 = arith.constant 1.004000e+00 : f32
    %15 = vector.broadcast %cst_5 : f32 to vector<1x128xf32>
    %16 = arith.maximumf %14, %15 : vector<1x128xf32>
    %17 = arith.mulf %16, %16 : vector<1x128xf32>
    %cst_6 = arith.constant 1.000000e+00 : f32
    %18 = vector.broadcast %cst_6 : f32 to vector<1x128xf32>
    %19 = arith.subf %17, %18 : vector<1x128xf32>
    %20 = math.sqrt %19 : vector<1x128xf32>
    %21 = arith.addf %16, %20 : vector<1x128xf32>
    %22 = math.log %21 : vector<1x128xf32>
    %23 = arith.divf %22, %13 : vector<1x128xf32>
    %24 = vector.broadcast %23 : vector<1x128xf32> to vector<32x128xf32>
    %25 = arith.mulf %24, %7 : vector<32x128xf32>
    %cst_7 = arith.constant dense<0.000000e+00> : vector<48x128xf32>
    %26 = tpu.matmul %0, %25, %cst_7 {dimension_numbers = #tpu.dot_dimension_numbers<[1], [0], [0], [1], [0, 0, 1, 1], [], []>} : vector<48x32xf32>, vector<32x128xf32>, vector<48x128xf32> -> vector<48x128xf32>
    %cst_8 = arith.constant 0.000000e+00 : f32
    %27 = vector.broadcast %cst_8 : f32 to vector<48x128xf32>
    %28 = arith.select %3, %26, %27 : vector<48x128xi1>, vector<48x128xf32>
    %29 = arith.mulf %28, %28 : vector<48x128xf32>
    %cst_9 = arith.constant dense<0.000000e+00> : vector<128xf32>
    %30 = vector.multi_reduction <add>, %29, %cst_9 [0] : vector<48x128xf32> to vector<128xf32>
    %31 = vector.shape_cast %30 : vector<128xf32> to vector<1x128xf32>
    %32 = math.sqrt %31 : vector<1x128xf32>
    %cst_10 = arith.constant 1.000000e-15 : f32
    %33 = vector.broadcast %cst_10 : f32 to vector<1x128xf32>
    %34 = arith.maximumf %32, %33 : vector<1x128xf32>
    %35 = math.exp %34 : vector<1x128xf32>
    %cst_11 = arith.constant 0.000000e+00 : f32
    %36 = vector.broadcast %cst_11 : f32 to vector<1x128xf32>
    %37 = arith.subf %36, %34 : vector<1x128xf32>
    %38 = math.exp %37 : vector<1x128xf32>
    %39 = arith.subf %35, %38 : vector<1x128xf32>
    %cst_12 = arith.constant 5.000000e-01 : f32
    %40 = vector.broadcast %cst_12 : f32 to vector<1x128xf32>
    %41 = arith.mulf %40, %39 : vector<1x128xf32>
    %42 = arith.divf %41, %34 : vector<1x128xf32>
    %43 = vector.broadcast %42 : vector<1x128xf32> to vector<48x128xf32>
    %44 = arith.mulf %43, %28 : vector<48x128xf32>
    %45 = arith.mulf %44, %44 : vector<48x128xf32>
    %cst_13 = arith.constant dense<0.000000e+00> : vector<128xf32>
    %46 = vector.multi_reduction <add>, %45, %cst_13 [0] : vector<48x128xf32> to vector<128xf32>
    %47 = vector.shape_cast %46 : vector<128xf32> to vector<1x128xf32>
    %cst_14 = arith.constant 1.00200069 : f32
    %48 = vector.broadcast %cst_14 : f32 to vector<48x128xf32>
    %49 = arith.mulf %48, %44 : vector<48x128xf32>
    %cst_15 = arith.constant 1.00400531 : f32
    %50 = vector.broadcast %cst_15 : f32 to vector<1x128xf32>
    %51 = arith.mulf %50, %47 : vector<1x128xf32>
    %cst_16 = arith.constant 4.000000e-03 : f32
    %52 = vector.broadcast %cst_16 : f32 to vector<1x128xf32>
    %53 = arith.maximumf %51, %52 : vector<1x128xf32>
    %54 = math.sqrt %53 : vector<1x128xf32>
    %55 = vector.shape_cast %54 : vector<1x128xf32> to vector<1x128xf32>
    %56 = vector.broadcast %55 : vector<1x128xf32> to vector<48x128xf32>
    %57 = arith.select %3, %49, %56 : vector<48x128xi1>, vector<48x128xf32>
    %c0_17 = arith.constant 0 : index
    %c0_18 = arith.constant 0 : index
    %58 = vector.load %arg4[%c0_17, %c0_18] : memref<48x128xf32, #tpu.memory_space<vmem>>, vector<48x128xf32>
    tpu.vector_store %arg4[%c0_17, %c0_18], %57 {strides = array<i32>} : memref<48x128xf32, #tpu.memory_space<vmem>>, vector<48x128xf32>,
    return
  }
  func.func @transform_0(%arg0: i32) -> (i32, i32) {
    %c0_i32 = arith.constant 0 : i32
    %c0_i32_0 = arith.constant 0 : i32
    return %c0_i32, %arg0 : i32, i32
  }
  func.func @transform_1(%arg0: i32) -> (i32, i32) {
    %c0_i32 = arith.constant 0 : i32
    %c0_i32_0 = arith.constant 0 : i32
    %c0_i32_1 = arith.constant 0 : i32
    return %c0_i32, %c0_i32_0 : i32, i32
  }
  func.func @transform_2(%arg0: i32) -> (i32, i32) {
    %c0_i32 = arith.constant 0 : i32
    %c0_i32_0 = arith.constant 0 : i32
    %c0_i32_1 = arith.constant 0 : i32
    return %c0_i32, %c0_i32_0 : i32, i32
  }
  func.func @transform_3(%arg0: i32) -> (i32, i32) {
    %c0_i32 = arith.constant 0 : i32
    %c0_i32_0 = arith.constant 0 : i32
    return %c0_i32, %arg0 : i32, i32
  }
}

</mosaic_0001>

<bundles_post_ra>
// kernel: tpu_custom_call.1
= control target key start
LH: loop header
LB: loop body
LE: loop exit
PB: predicated region body
PF: predicated region fallthrough
CT: control target
= control target key end

     0   :  { %8 = vsyncpa [#allocation4], 0  ;;  %s925_s0 = inlined_call_operand.vmem [shape: f32[32,256], index: 0, kind: input, shape index: {}]   ;;  %s926_s1 = inlined_call_operand.vmem [shape: f32[48,32], index: 1, kind: input, shape index: {}]   ;;  %s927_s2 = inlined_call_operand.vmem [shape: f32[48,1], index: 2, kind: input, shape index: {}]   ;;  %s928_s3 = inlined_call_operand.hbm [shape: f32[48,256], index: 3, kind: output, shape index: {}]  }
   0x1   :  { %10 = vsyncpa [#allocation4 + $0x1], 0  ;;  %s771_s12 = smov 0   ;;  %s773_s13 = smov 0  }
   0x2   :  { %s775_s14 = smov 0   ;;  %s777_s15 = smov 0  }
   0x3 LB: > { %s571_s2 = sadd.s32 4294967295, %s745_s15   ;;  %s572_s16 = sadd.s32 4294967294, %s745_s15   ;;  %s745_s15 = sphi %s777_s15, %s934_s15   ;;  %s741_s14 = sphi %s775_s14, %s933_s14   ;;  %s737_s13 = sphi %s773_s13, %s932_s13   ;;  %s733_s12 = sphi %s771_s12, %s931_s12  }
   0x4   : > { %s794_s17 = sadd.s32 1, %s745_s15   ;;  %s23_s18 = sadd.s32 1, %s741_s14 }
   0x5   : > { %s20_s19 = ssub.s32 %s745_s15, %s794_s17  ;;  %p30_p0 = scmp.ne.s32.totalorder %s741_s14, %s737_s13 }
   0x6   : > { %p21_p1 = scmp.eq.s32.totalorder %s20_s19, 0  ;;  %p31_p2 = scmp.eq.s32.totalorder %s745_s15, 0 }
   0x7   : > { %p102_p3 = scmp.eq.s32.totalorder %s571_s2, 1  ;;  %p107_p4 = scmp.ne.s32.totalorder %s737_s13, %s733_s12 }
   0x8   : > { %s807_s20 = scalar_select %p21_p1, %s741_s14, %s23_s18  }
   0x9   : > { %p32_p5 = por %p31_p2, %p30_p0  ;;  %p809_p6 = por %p102_p3, %p30_p0 }
   0xa   : > { %p108_p7 = scmp.eq.s32.totalorder %s572_s16, 1  ;;  %p574_p9 = scmp.ge.s32.totalorder %s745_s15, 2 }
   0xc   : > { %p813_p8 = por %p108_p7, %p107_p4  ;;  %130 = sbr.rel (%p574_p9) target bundleno = 23 (0x17), region = 24 }
  0x11   : > { %133 = sbr.rel (!%p32_p5) target bundleno = 23 (0x17), region = 28  ;;  %s135_s23 = sand.u32 (%p32_p5), 1, %s741_s14  }
  0x12   : > { %s576_s24 = sshll.u32 (%p32_p5), %s745_s15, 3  ;;  %s575_s25 = sshll.u32 (%p32_p5), %s135_s23, 5 }
  0x13   : > { %s139_s28 = scalar_lea.vmem (%p32_p5), %s925_s0, %s576_s24  ;;  %s137_s29 = scalar_lea.vmem (%p32_p5), [#allocation2], %s575_s25 }
  0x14   : > { %v174_v0 = vld [vmem:[%s139_s28] sm:$0xff] (%p32_p5)  ;;  %v176_v1 = vld [vmem:[%s139_s28 + $0x10] sm:$0xff] (%p32_p5) }
  0x15   : > { %v178_v2 = vld [vmem:[%s139_s28 + $0x20] sm:$0xff] (%p32_p5)  ;;  %175 = vst [vmem:[%s137_s29] sm:$0xff] (%p32_p5), %v174_v0  ;;  %177 = vst [vmem:[%s137_s29 + $0x8] sm:$0xff] (%p32_p5), %v176_v1  ;;  %v180_v3 = vld [vmem:[%s139_s28 + $0x30] sm:$0xff] (%p32_p5) }
  0x16   : > { %179 = vst [vmem:[%s137_s29 + $0x10] sm:$0xff] %v178_v2  ;;  %181 = vst [vmem:[%s137_s29 + $0x18] sm:$0xff] %v180_v3 }
  0x17 PF: > { %p577_p10 = scmp.ge.s32.totalorder %s745_s15, 1  ;;  %p186_p11 = scmp.lt.s32.totalorder %s745_s15, 3 }
  0x19   : > { %p187_p12 = pnand %p577_p10, %p186_p11 }
  0x1a   : > { %s828_s30 = sand.u32 (!%p187_p12), 1, %s737_s13   ;;  %s586_s29 = sshll.u32 (!%p187_p12), %s571_s2, 7 }
  0x1b   : > { %190 = sbr.rel (%p187_p12) target bundleno = 434 (0x1b2), region = 66  ;;  %s578_s8 = sshll.u32 (!%p187_p12), %s828_s30, 5 }
  0x1c   : > { %s195_s9 = scalar_lea.vmem (!%p187_p12), [#allocation2], %s578_s8  ;;  %s624_s26 = smul.u32 (!%p187_p12), 48, %s828_s30 }
  0x1d   : > { %s879_s6 = scalar_lea.hbm (!%p187_p12), %s928_s3, %s586_s29  ;;  %s492_s2 = scalar_lea.sflag (!%p187_p12), [#allocation4], %s828_s30 }
  0x1e   : > { %s864_s27 = scalar_lea.vmem (!%p187_p12), [#allocation3], %s624_s26  ;;  %s747_s8 = smov (!%p187_p12), [#allocation3]  }
  0x1f   : > { %s504_s28 = sshll.u32 (!%p187_p12), %s864_s27, 4  ;;  %s874_s28 = int_to_ptr.vmem [resolvable:$true] %s504_s28 }
  0x20   : > { %v222_v4 = vlaneseq  ;;  %v216_v5 = vld [vmem:[%s926_s1] sm:$0xff]  ;;  %vm287_vm0 = vcmask 261120   ;;  %v218_v6 = vld [vmem:[%s926_s1 + $0x10] sm:$0xff]  ;;  %v236_v9 = vld [vmem:[%s195_s9 + $0x8] sm:$0xff]  ;;  %s685_s7 = scalar_lea.vmem %s874_s28, 768 }
  0x21   : > { %607 = vmatprep.mubr.msk.f32.mxu0 %vm287_vm0, %v216_v5  ;;  %610 = vmatprep.mubr.msk.f32.mxu1 %vm287_vm0, %v218_v6  ;;  %v235_v8 = vld [vmem:[%s195_s9] sm:$0xff]  ;;  %v237_v10 = vld [vmem:[%s195_s9 + $0x10] sm:$0xff]  ;;  %v244_v11 = vmul.f32 %v236_v9, %v236_v9  ;;  %v238_v13 = vld [vmem:[%s195_s9 + $0x18] sm:$0xff]  ;;  %p686_p13 = scmp.ne.s32.totalorder %s874_s28, %s685_s7  ;;  %s689_s9 = sshll.u32 %s747_s8, 4  ;;  %s690_s9 = int_to_ptr.vmem [resolvable:$false] %s689_s9 }
  0x22   : > { %v839_v7 = vshrl.u32 %v222_v4, 7  ;;  %v264_v12 = vmax.f32 %v235_v8, 1.004  ;;  %v245_v16 = vmul.f32 %v237_v10, %v237_v10  ;;  %v246_v18 = vmul.f32 %v238_v13, %v238_v13  ;;  %v217_v51 = vld [vmem:[%s926_s1 + $0x8] sm:$0xff]  ;;  %v219_v52 = vld [vmem:[%s926_s1 + $0x18] sm:$0xff]  ;;  %v220_v53 = vld [vmem:[%s926_s1 + $0x20] sm:$0xff]  ;;  %p692_p2 = scmp.lt.s32.totalorder %s874_s28, %s690_s9 }
  0x23   : > { %v221_v54 = vld [vmem:[%s926_s1 + $0x28] sm:$0xff]  ;;  %p687_p0 = pnand %p686_p13, %p809_p6  ;;  %s691_s10 = scalar_lea.vmem %s690_s9, 1536 }
  0x24   : > { %vm229_vm1 = vcmp.ne.s32.totalorder %v839_v7, 0  ;;  %v265_v17 = vmul.f32 %v264_v12, %v264_v12  ;;  %v281_v43 = vsub.s32 0, %v839_v7  ;;  %p693_p3 = scmp.lt.s32.totalorder %s691_s10, %s685_s7 }
  0x25   : > { %v239_v14 = vsel %vm229_vm1, %v235_v8, 0.0  ;;  %p688_p1 = pneg %p687_p0 }
  0x26   : > { %v243_v15 = vmul.f32 %v239_v14, %v239_v14  ;;  %v579_v20 = vadd.f32 -1.0, %v265_v17  ;;  %p694_p4 = por %p693_p3, %p692_p2 }
  0x28   : > { %v247_v19 = vadd.f32 %v244_v11, %v243_v15  ;;  %667 = vrsqrt.f32 %v579_v20  ;;  %vm269_vm2 = vcmp.eq.f32.partialorder %v579_v20, inf  ;;  %v272_v31 = vand.u32 2147483648, %v579_v20  ;;  %p695_p5 = pnand %p694_p4, %p688_p1 }
  0x29   : > { %vm271_vm3 = vcmp.eq.f32.partialorder %v579_v20, 0.0 }
  0x2a   : > { %v248_v21 = vadd.f32 %v247_v19, %v245_v16 }
  0x2c   : > { %v249_v22 = vadd.f32 %v248_v21, %v246_v18 }
  0x2e   : > { %v250_v23 = vrot.slane %v249_v22, 4 }
  0x30   : > { %v251_v24 = vadd.f32 %v250_v23, %v249_v22 }
  0x32   : > { %v252_v25 = vrot.slane %v251_v24, 2 }
  0x34   : > { %v253_v26 = vadd.f32 %v252_v25, %v251_v24 }
  0x35   : > { %v668_v28 = vpop.eup %667 }
  0x36   : > { %v254_v27 = vrot.slane %v253_v26, 1  ;;  %v268_v30 = vmul.f32 %v668_v28, %v579_v20 }
  0x38   : > { %v255_v29 = vadd.f32 %v254_v27, %v253_v26  ;;  %v270_v32 = vsel %vm269_vm2, %v579_v20, %v268_v30 }
  0x39   : > { %v273_v33 = vsel %vm271_vm3, %v272_v31, %v270_v32 }
  0x3a   : > { %669 = vrsqrt.f32 %v255_v29  ;;  %v274_v34 = vadd.f32 %v273_v33, %v264_v12  ;;  %vm258_vm4 = vcmp.eq.f32.partialorder %v255_v29, inf  ;;  %v261_v36 = vand.u32 2147483648, %v255_v29 }
  0x3b   : > { %vm260_vm5 = vcmp.eq.f32.partialorder %v255_v29, 0.0 }
  0x3c   : > { %671 = vlog2.f32 %v274_v34 }
  0x47   : > { %v670_v35 = vpop.eup %669 }
  0x48   : > { %v257_v37 = vmul.f32 %v670_v35, %v255_v29 }
  0x49   : > { %v672_v41 = vpop.eup %671 }
  0x4a   : > { %v259_v38 = vsel %vm258_vm4, %v255_v29, %v257_v37  ;;  %v276_v42 = vmul.f32 0.6931472, %v672_v41 }
  0x4b   : > { %v262_v39 = vsel %vm260_vm5, %v261_v36, %v259_v38 }
  0x4c   : > { %v263_v40 = vmax.f32 %v262_v39, 1e-15 }
  0x4e   : > { %673 = vrcp.f32 %v263_v40 }
  0x5b   : > { %v674_v44 = vpop.eup %673 }
  0x5c   : > { %v278_v45 = vmul.f32 %v674_v44, %v276_v42 }
  0x5e   : > { %v282_v46 = vrot.slane %v278_v45, %v281_v43 }
  0x60   : > { %v286_v47 = vmul.f32 %v282_v46, %v238_v13  ;;  %v285_v48 = vmul.f32 %v282_v46, %v237_v10  ;;  %v284_v49 = vmul.f32 %v282_v46, %v236_v9  ;;  %v283_v50 = vmul.f32 %v282_v46, %v239_v14 }
  0x62   : > { %599 = vmatprep.subr.mxu0 %v286_v47  ;;  %616 = vmatprep.subr.mxu1 %v286_v47 }
  0x63   : > { %600 = vmatpush3.msra.mxu0 %v286_v47  ;;  %620 = vmatpush3.msra.mxu1 %v286_v47 }
  0x64   : > { %601 = vmatprep.subr.mxu0 %v285_v48  ;;  %617 = vmatprep.subr.mxu1 %v285_v48 }
  0x65   : > { %602 = vmatpush3.msra.mxu0 %v285_v48  ;;  %621 = vmatpush3.msra.mxu1 %v285_v48 }
  0x66   : > { %603 = vmatprep.subr.mxu0 %v284_v49  ;;  %618 = vmatprep.subr.mxu1 %v284_v49 }
  0x67   : > { %604 = vmatpush3.msra.mxu0 %v284_v49  ;;  %622 = vmatpush3.msra.mxu1 %v284_v49 }
  0x68   : > { %605 = vmatprep.subr.mxu0 %v283_v50  ;;  %619 = vmatprep.subr.mxu1 %v283_v50 }
  0x69   : > { %606 = vmatpush3.msra.mxu0 %v283_v50  ;;  %623 = vmatpush3.msra.mxu1 %v283_v50 }
  0x6a   : > { %608 = vmatmul.mubr.msk.f32.vlgmr.msra.gmra.mxu0 %vm287_vm0, %v217_v51  ;;  %611 = vmatmul.mubr.msk.f32.vlgmr.msra.gmra.mxu1 %vm287_vm0, %v219_v52 }
  0x6b   : > { %613 = vmatprep.mubr.msk.f32.mxu1 %vm287_vm0, %v220_v53 }
  0x6e   : > { %614 = vmatmul.mubr.msk.f32.gmra.mxu1 %vm287_vm0, %v221_v54 }
 0x12a   : > { %v609_v55 = vpop.f32.mrf.mxu0  ;;  %v612_v56 = vpop.f32.mrf.mxu1 }
 0x12b   : > { %v408_v60 = vmul.f32 %v609_v55, %v609_v55  ;;  %v410_v2 = vmul.f32 %v612_v56, %v612_v56 }
 0x12c   : > { %v372_v57 = vpop.f32.mrf.mxu0  ;;  %v382_v58 = vpop.f32.mrf.mxu1 }
 0x12d   : > { %v401_v59 = vsel %vm229_vm1, %v372_v57, 0.0  ;;  %v409_v0 = vmul.f32 %v382_v58, %v382_v58 }
 0x12e   : > { %v407_v61 = vmul.f32 %v401_v59, %v401_v59  ;;  %v615_v62 = vpop.f32.mrf.mxu1 }
 0x12f   : > { %v412_v6 = vmul.f32 %v615_v62, %v615_v62 }
 0x130   : > { %v413_v63 = vadd.f32 %v408_v60, %v407_v61  ;;  %v392_v1 = vpop.f32.mrf.mxu1 }
 0x131   : > { %v411_v4 = vmul.f32 %v392_v1, %v392_v1 }
 0x132   : > { %v414_v3 = vadd.f32 %v413_v63, %v409_v0 }
 0x134   : > { %v415_v5 = vadd.f32 %v414_v3, %v410_v2 }
 0x136   : > { %v416_v8 = vadd.f32 %v415_v5, %v411_v4 }
 0x138   : > { %v417_v9 = vadd.f32 %v416_v8, %v412_v6 }
 0x13a   : > { %v418_v10 = vrot.slane %v417_v9, 4 }
 0x13c   : > { %v419_v11 = vadd.f32 %v418_v10, %v417_v9 }
 0x13e   : > { %v420_v12 = vrot.slane %v419_v11, 2 }
 0x140   : > { %v421_v13 = vadd.f32 %v420_v12, %v419_v11 }
 0x142   : > { %v422_v14 = vrot.slane %v421_v13, 1 }
 0x144   : > { %v423_v15 = vadd.f32 %v422_v14, %v421_v13 }
 0x146   : > { %675 = vrsqrt.f32 %v423_v15  ;;  %vm426_vm6 = vcmp.eq.f32.partialorder %v423_v15, inf  ;;  %v429_v18 = vand.u32 2147483648, %v423_v15  ;;  %vm428_vm7 = vcmp.eq.f32.partialorder %v423_v15, 0.0 }
 0x153   : > { %v676_v16 = vpop.eup %675 }
 0x154   : > { %v425_v17 = vmul.f32 %v676_v16, %v423_v15 }
 0x156   : > { %v427_v19 = vsel %vm426_vm6, %v423_v15, %v425_v17 }
 0x157   : > { %v430_v20 = vsel %vm428_vm7, %v429_v18, %v427_v19 }
 0x158   : > { %v431_v21 = vmax.f32 %v430_v20, 1e-15 }
 0x15a   : > { %v432_v22 = vmul.f32 1.442695, %v431_v21  ;;  %v434_v23 = vsub.f32 0.0, %v431_v21 }
 0x15c   : > { %v435_v24 = vmul.f32 1.442695, %v434_v23  ;;  %677 = vpow2.f32 %v432_v22 }
 0x15e   : > { %679 = vpow2.f32 %v435_v24 }
 0x15f   : > { %681 = vrcp.f32 %v431_v21 }
 0x169   : > { %v678_v25 = vpop.eup %677 }
 0x16b   : > { %v680_v26 = vpop.eup %679 }
 0x16c   : > { %v437_v27 = vsub.f32 %v678_v25, %v680_v26  ;;  %v682_v29 = vpop.eup %681 }
 0x16e   : > { %v438_v28 = vmul.f32 0.5, %v437_v27 }
 0x170   : > { %v440_v30 = vmul.f32 %v682_v29, %v438_v28 }
 0x172   : > { %v441_v31 = vmul.f32 %v440_v30, %v401_v59  ;;  %v442_v32 = vmul.f32 %v609_v55, %v440_v30  ;;  %v443_v33 = vmul.f32 %v440_v30, %v382_v58  ;;  %v444_v34 = vmul.f32 %v612_v56, %v440_v30 }
 0x173   : > { %v445_v35 = vmul.f32 %v440_v30, %v392_v1  ;;  %v446_v36 = vmul.f32 %v615_v62, %v440_v30 }
 0x174   : > { %v447_v37 = vmul.f32 %v441_v31, %v441_v31  ;;  %v448_v38 = vmul.f32 %v442_v32, %v442_v32  ;;  %v449_v39 = vmul.f32 %v443_v33, %v443_v33  ;;  %v465_v40 = vmul.f32 1.0020007, %v442_v32 }
 0x175   : > { %v466_v42 = vmul.f32 1.0020007, %v443_v33  ;;  %v467_v43 = vmul.f32 1.0020007, %v444_v34  ;;  %v468_v44 = vmul.f32 1.0020007, %v445_v35  ;;  %v450_v46 = vmul.f32 %v444_v34, %v444_v34 }
 0x176   : > { %v453_v41 = vadd.f32 %v448_v38, %v447_v37  ;;  %v469_v45 = vmul.f32 1.0020007, %v446_v36  ;;  %486 = vst [vmem:[%s864_s27 + $0x8] sm:$0xff] %v465_v40  ;;  %v451_v48 = vmul.f32 %v445_v35, %v445_v35  ;;  %v452_v50 = vmul.f32 %v446_v36, %v446_v36 }
 0x177   : > { %487 = vst [vmem:[%s864_s27 + $0x10] sm:$0xff] %v466_v42  ;;  %488 = vst [vmem:[%s864_s27 + $0x18] sm:$0xff] %v467_v43  ;;  %v464_v0 = vmul.f32 1.0020007, %v441_v31 }
 0x178   : > { %v454_v47 = vadd.f32 %v453_v41, %v449_v39  ;;  %489 = vst [vmem:[%s864_s27 + $0x20] sm:$0xff] %v468_v44  ;;  %490 = vst [vmem:[%s864_s27 + $0x28] sm:$0xff] %v469_v45 }
 0x17a   : > { %v455_v49 = vadd.f32 %v454_v47, %v450_v46 }
 0x17c   : > { %v456_v51 = vadd.f32 %v455_v49, %v451_v48 }
 0x17e   : > { %v457_v52 = vadd.f32 %v456_v51, %v452_v50 }
 0x180   : > { %v458_v53 = vrot.slane %v457_v52, 4 }
 0x182   : > { %v459_v54 = vadd.f32 %v458_v53, %v457_v52 }
 0x184   : > { %v460_v55 = vrot.slane %v459_v54, 2 }
 0x186   : > { %v461_v56 = vadd.f32 %v460_v55, %v459_v54 }
 0x188   : > { %v462_v57 = vrot.slane %v461_v56, 1 }
 0x18a   : > { %v463_v58 = vadd.f32 %v462_v57, %v461_v56 }
 0x18c   : > { %v470_v59 = vmul.f32 1.0040053, %v463_v58 }
 0x18e   : > { %v471_v60 = vmax.f32 %v470_v59, 0.004 }
 0x190   : > { %683 = vrsqrt.f32 %v471_v60  ;;  %vm474_vm8 = vcmp.eq.f32.partialorder %v471_v60, inf  ;;  %v477_v63 = vand.u32 2147483648, %v471_v60  ;;  %vm476_vm9 = vcmp.eq.f32.partialorder %v471_v60, 0.0 }
 0x19d   : > { %v684_v61 = vpop.eup %683 }
 0x19e   : > { %v473_v62 = vmul.f32 %v684_v61, %v471_v60 }
 0x1a0   : > { %v475_v1 = vsel %vm474_vm8, %v471_v60, %v473_v62 }
 0x1a1   : > { %v478_v2 = vsel %vm476_vm9, %v477_v63, %v475_v1 }
 0x1a2   : > { %v479_v3 = vsel %vm229_vm1, %v464_v0, %v478_v2 }
 0x1a3   : > { %485 = vst [vmem:[%s864_s27] sm:$0xff] %v479_v3 }
 0x1a4   : > { %698 = shalt.err (!%p695_p5)
}
 0x1a5   : > { %s699_s11 = scalar_lea.hbm %s879_s6, 768  ;;  %s703_s19 = scalar_lea.hbm %s928_s3, 1536 }
 0x1a6   : > { %p700_p7 = scmp.ne.s32.totalorder %s879_s6, %s699_s11  ;;  %p704_p12 = scmp.lt.s32.totalorder %s879_s6, %s928_s3 }
 0x1a7   : > { %p705_p13 = scmp.lt.s32.totalorder %s703_s19, %s699_s11 }
 0x1a8   : > { %p701_p10 = pnand %p700_p7, %p809_p6 }
 0x1a9   : > { %p706_p0 = por %p705_p13, %p704_p12 }
 0x1aa   : > { %p702_p11 = pneg %p701_p10 }
 0x1ac   : > { %p707_p1 = pnand %p706_p0, %p702_p11 }
 0x1ae   : > { %710 = shalt.err (!%p707_p1)
}
 0x1af   : > { %s748_s25 = smov 128   ;;  %s749_s26 = smov 256  }
 0x1b0   : > { %s750_s27 = smov 8  }
 0x1b1   : > { %625 = dma.vmem_to_hbm [thread:$0]  (%p809_p6), %s874_s28, 768, %s879_s6, %s492_s2, %s748_s25, %s749_s26, %s750_s27  }
 0x1b2 PF: > { %s519_s29 = sand.u32 1, %s733_s12   ;;  %p628_p2 = pnand %p574_p9, %p813_p8 }
 0x1b3   : > { %s520_s4 = scalar_lea.sflag [#allocation4], %s519_s29 }
 0x1b4   : > { %p629_p3 = pneg %p628_p2 }
 0x1b6   : > { %728 = dma.done.wait (%p629_p3), %s520_s4, 768  }
 0x1b7   : > { %730 = vsyncadd (%p629_p3), %s520_s4, 4294966528  ;;  %p13_p4 = scmp.ge.s32.totalorder %s794_s17, 4   ;;  %s931_s12 = smov %s737_s13 }
 0x1b8   : > { %s932_s13 = smov %s741_s14  ;;  %s933_s14 = smov %s807_s20 }
 0x1b9   : > { %s934_s15 = smov %s794_s17  ;;  %15 = sbr.rel (!%p13_p4) target bundleno = 3 (0x3), region = 110 }
 0x1be   :  { %525 = vsyncpa [#allocation4], 1 }
 0x1bf   :  { %527 = vsyncpa [#allocation4 + $0x1], 1 }

</bundles_post_ra>
